<compile_context>
chip_gen: v6e
topology: v6e:2x2x1
jax: 0.10.0
libtpu: 0.0.40
codegen_flags: <defaults>
</compile_context>

<pallas_src>
import jax
import jax.numpy as jnp
from jax.experimental import pallas as pl
from jax.experimental.pallas import tpu as pltpu


def _round_up(n, m):
    return ((n + m - 1) // m) * m


def _mlp_kernel(x_ref, w1_ref, b1_ref, w2_ref, b2_ref, o_ref):
    # linear1: (TB, Din) bf16 @ (Din, H) bf16 -> f32 accumulate on the MXU
    x = x_ref[...].astype(jnp.bfloat16)
    h = jnp.dot(x, w1_ref[...], preferred_element_type=jnp.float32)
    # bias add + LeakyReLU (negative_slope = 0.01, PyTorch nn.LeakyReLU default) in f32
    h = h + b1_ref[...]
    h = jnp.where(h >= 0, h, 0.01 * h)
    # linear2: cast activation to bf16 for the MXU, accumulate in f32
    out = jnp.dot(h.astype(jnp.bfloat16), w2_ref[...],
                  preferred_element_type=jnp.float32)
    o_ref[...] = (out + b2_ref[...]).astype(o_ref.dtype)


def neural_net_forward(x, w1, b1, w2, b2, *, tile_batch=2048):
    """Fused MLP forward.

    x:  (B, Din)   float
    w1: (Din, H)   float   (PyTorch linear1.weight transposed)
    b1: (H,) or (1, H)
    w2: (H, Dout)  float   (PyTorch linear2.weight transposed)
    b2: (Dout,) or (1, Dout)
    Returns (B, Dout) float32.
    """
    B, Din = x.shape
    H = w1.shape[1]
    Dout = w2.shape[1]

    x = x.astype(jnp.float32)
    w1 = w1.astype(jnp.bfloat16)
    w2 = w2.astype(jnp.bfloat16)
    b1 = b1.reshape(1, H).astype(jnp.float32)
    b2 = b2.reshape(1, Dout).astype(jnp.float32)

    # Batch tile: multiple of 8 (sublane), capped at tile_batch. Pad batch only up
    # to a multiple of 8 so the block never exceeds the array extent for tiny B.
    TB = min(tile_batch, _round_up(B, 8))
    B_pad = _round_up(B, 8)
    if B_pad != B:
        x = jnp.pad(x, ((0, B_pad - B), (0, 0)))

    num_tiles = pl.cdiv(B_pad, TB)

    out = pl.pallas_call(
        _mlp_kernel,
        out_shape=jax.ShapeDtypeStruct((B_pad, Dout), jnp.float32),
        grid_spec=pl.GridSpec(
            grid=(num_tiles,),
            in_specs=[
                pl.BlockSpec((TB, Din), lambda i: (i, 0)),    # x: tiled over batch
                pl.BlockSpec((Din, H), lambda i: (0, 0)),     # w1: VMEM-resident
                pl.BlockSpec((1, H), lambda i: (0, 0)),       # b1: VMEM-resident
                pl.BlockSpec((H, Dout), lambda i: (0, 0)),    # w2: VMEM-resident
                pl.BlockSpec((1, Dout), lambda i: (0, 0)),    # b2: VMEM-resident
            ],
            out_specs=pl.BlockSpec((TB, Dout), lambda i: (i, 0)),
        ),
        compiler_params=pltpu.CompilerParams(
            dimension_semantics=("parallel",),
        ),
    )(x, w1, b1, w2, b2)

    if B_pad != B:
        out = out[:B]
    return out


def init_params(key, input_size, hidden_size, output_size):
    """Deterministic init mimicking PyTorch nn.Linear default (uniform +-1/sqrt(fan_in)).
    Weights are stored transposed: (in_features, out_features)."""
    k1, k2, k3, k4 = jax.random.split(key, 4)
    bound1 = 1.0 / jnp.sqrt(input_size)
    bound2 = 1.0 / jnp.sqrt(hidden_size)
    w1 = jax.random.uniform(k1, (input_size, hidden_size), jnp.float32, -bound1, bound1)
    b1 = jax.random.uniform(k2, (1, hidden_size), jnp.float32, -bound1, bound1)
    w2 = jax.random.uniform(k3, (hidden_size, output_size), jnp.float32, -bound2, bound2)
    b2 = jax.random.uniform(k4, (1, output_size), jnp.float32, -bound2, bound2)
    return w1, b1, w2, b2


def reference_forward_bf16(x, w1, b1, w2, b2):
    """Reference matching the kernel's bf16-operand / f32-accumulate arithmetic."""
    h = jnp.dot(x.astype(jnp.bfloat16), w1.astype(jnp.bfloat16),
                preferred_element_type=jnp.float32) + b1
    h = jnp.where(h >= 0, h, 0.01 * h)
    return jnp.dot(h.astype(jnp.bfloat16), w2.astype(jnp.bfloat16),
                   preferred_element_type=jnp.float32) + b2


def reference_forward_f32(x, w1, b1, w2, b2):
    h = x @ w1 + b1
    h = jnp.where(h >= 0, h, 0.01 * h)
    return h @ w2 + b2


if __name__ == "__main__":
    batch = 8
    input_size = 16
    hidden_size = 128   # matches the module's hidden_size constant
    output_size = 8

    key = jax.random.PRNGKey(0)
    kx, kp = jax.random.split(key)
    x = jax.random.normal(kx, (batch, input_size), jnp.float32)
    w1, b1, w2, b2 = init_params(kp, input_size, hidden_size, output_size)

    out = neural_net_forward(x, w1, b1, w2, b2)
    out = jax.block_until_ready(out)

    assert out.shape == (batch, output_size)

    # Check against a reference that mirrors the kernel's bf16/f32 arithmetic (tight),
    # and against the pure-f32 math with bf16-appropriate tolerance (sanity).
    ref_bf16 = reference_forward_bf16(x, w1, b1, w2, b2)
    ref_f32 = reference_forward_f32(x, w1, b1, w2, b2)
    assert jnp.allclose(out, ref_bf16, atol=1e-3, rtol=1e-3)
    assert jnp.allclose(out, ref_f32, atol=5e-2, rtol=5e-2)

    print("KERNEL_OK")
</pallas_src>

<mosaic_0001>
module attributes {stable_mosaic.version = 11 : i64} {
  func.func @_mlp_kernel(%arg0: i32, %arg1: memref<8x16xf32, #tpu.memory_space<vmem>>, %arg2: memref<16x128xbf16, #tpu.memory_space<vmem>>, %arg3: memref<1x128xf32, #tpu.memory_space<vmem>>, %arg4: memref<128x8xbf16, #tpu.memory_space<vmem>>, %arg5: memref<1x8xf32, #tpu.memory_space<vmem>>, %arg6: memref<8x8xf32, #tpu.memory_space<vmem>>) attributes {dimension_semantics = [#tpu.dimension_semantics<parallel>], iteration_bounds = array<i64: 1>, scalar_prefetch = 0 : i64, scratch_operands = 0 : i64, tpu.core_type = #tpu.core_type<tc>, window_params = [{transform_indices = @transform_0, window_bounds = array<i64: 8, 16>}, {pipeline_mode = #tpu.pipeline_mode<synchronous>, transform_indices = @transform_1, window_bounds = array<i64: 16, 128>}, {pipeline_mode = #tpu.pipeline_mode<synchronous>, transform_indices = @transform_2, window_bounds = array<i64: 1, 128>}, {pipeline_mode = #tpu.pipeline_mode<synchronous>, transform_indices = @transform_3, window_bounds = array<i64: 128, 8>}, {pipeline_mode = #tpu.pipeline_mode<synchronous>, transform_indices = @transform_4, window_bounds = array<i64: 1, 8>}, {transform_indices = @transform_5, window_bounds = array<i64: 8, 8>}]} {
    %c0 = arith.constant 0 : index
    %c0_0 = arith.constant 0 : index
    %0 = vector.load %arg1[%c0, %c0_0] : memref<8x16xf32, #tpu.memory_space<vmem>>, vector<8x16xf32>
    %1 = arith.truncf %0 : vector<8x16xf32> to vector<8x16xbf16>
    %c0_1 = arith.constant 0 : index
    %c0_2 = arith.constant 0 : index
    %2 = vector.load %arg2[%c0_1, %c0_2] : memref<16x128xbf16, #tpu.memory_space<vmem>>, vector<16x128xbf16>
    %cst = arith.constant dense<0.000000e+00> : vector<8x128xf32>
    %3 = tpu.matmul %1, %2, %cst {dimension_numbers = #tpu.dot_dimension_numbers<[1], [0], [0], [1], [0, 0, 1, 1], [], []>} : vector<8x16xbf16>, vector<16x128xbf16>, vector<8x128xf32> -> vector<8x128xf32>
    %c0_3 = arith.constant 0 : index
    %c0_4 = arith.constant 0 : index
    %4 = vector.load %arg3[%c0_3, %c0_4] : memref<1x128xf32, #tpu.memory_space<vmem>>, vector<1x128xf32>
    %5 = vector.broadcast %4 : vector<1x128xf32> to vector<8x128xf32>
    %6 = arith.addf %3, %5 : vector<8x128xf32>
    %cst_5 = arith.constant 0.000000e+00 : f32
    %7 = vector.broadcast %cst_5 : f32 to vector<8x128xf32>
    %8 = arith.cmpf oge, %6, %7 : vector<8x128xf32>
    %cst_6 = arith.constant 0.00999999977 : f32
    %9 = vector.broadcast %cst_6 : f32 to vector<8x128xf32>
    %10 = arith.mulf %9, %6 : vector<8x128xf32>
    %11 = arith.select %8, %6, %10 : vector<8x128xi1>, vector<8x128xf32>
    %12 = arith.truncf %11 : vector<8x128xf32> to vector<8x128xbf16>
    %c0_7 = arith.constant 0 : index
    %c0_8 = arith.constant 0 : index
    %13 = vector.load %arg4[%c0_7, %c0_8] : memref<128x8xbf16, #tpu.memory_space<vmem>>, vector<128x8xbf16>
    %cst_9 = arith.constant dense<0.000000e+00> : vector<8x8xf32>
    %14 = tpu.matmul %12, %13, %cst_9 {dimension_numbers = #tpu.dot_dimension_numbers<[1], [0], [0], [1], [0, 0, 1, 1], [], []>} : vector<8x128xbf16>, vector<128x8xbf16>, vector<8x8xf32> -> vector<8x8xf32>
    %c0_10 = arith.constant 0 : index
    %c0_11 = arith.constant 0 : index
    %15 = vector.load %arg5[%c0_10, %c0_11] : memref<1x8xf32, #tpu.memory_space<vmem>>, vector<1x8xf32>
    %16 = vector.broadcast %15 : vector<1x8xf32> to vector<8x8xf32>
    %17 = arith.addf %14, %16 : vector<8x8xf32>
    %c0_12 = arith.constant 0 : index
    %c0_13 = arith.constant 0 : index
    %18 = vector.load %arg6[%c0_12, %c0_13] : memref<8x8xf32, #tpu.memory_space<vmem>>, vector<8x8xf32>
    tpu.vector_store %arg6[%c0_12, %c0_13], %17 {strides = array<i32>} : memref<8x8xf32, #tpu.memory_space<vmem>>, vector<8x8xf32>,
    return
  }
  func.func @transform_0(%arg0: i32) -> (i32, i32) {
    %c0_i32 = arith.constant 0 : i32
    %c0_i32_0 = arith.constant 0 : i32
    return %arg0, %c0_i32 : i32, i32
  }
  func.func @transform_1(%arg0: i32) -> (i32, i32) {
    %c0_i32 = arith.constant 0 : i32
    %c0_i32_0 = arith.constant 0 : i32
    %c0_i32_1 = arith.constant 0 : i32
    return %c0_i32, %c0_i32_0 : i32, i32
  }
  func.func @transform_2(%arg0: i32) -> (i32, i32) {
    %c0_i32 = arith.constant 0 : i32
    %c0_i32_0 = arith.constant 0 : i32
    %c0_i32_1 = arith.constant 0 : i32
    return %c0_i32, %c0_i32_0 : i32, i32
  }
  func.func @transform_3(%arg0: i32) -> (i32, i32) {
    %c0_i32 = arith.constant 0 : i32
    %c0_i32_0 = arith.constant 0 : i32
    %c0_i32_1 = arith.constant 0 : i32
    return %c0_i32, %c0_i32_0 : i32, i32
  }
  func.func @transform_4(%arg0: i32) -> (i32, i32) {
    %c0_i32 = arith.constant 0 : i32
    %c0_i32_0 = arith.constant 0 : i32
    %c0_i32_1 = arith.constant 0 : i32
    return %c0_i32, %c0_i32_0 : i32, i32
  }
  func.func @transform_5(%arg0: i32) -> (i32, i32) {
    %c0_i32 = arith.constant 0 : i32
    %c0_i32_0 = arith.constant 0 : i32
    return %arg0, %c0_i32 : i32, i32
  }
}

</mosaic_0001>

<bundles_post_ra>
// kernel: tpu_custom_call.1
= control target key start
LH: loop header
LB: loop body
LE: loop exit
PB: predicated region body
PF: predicated region fallthrough
CT: control target
= control target key end

     0   :  { %v297_v1 = vmov 0.0   ;;  %vm39_vm0 = vcmask 130048   ;;  %vm298_vm1 = vmmov 0   ;;  %s369_s0 = inlined_call_operand.vmem [shape: f32[8,16], index: 0, kind: input, shape index: {}]   ;;  %s370_s1 = inlined_call_operand.vmem [shape: bf16[16,128], index: 1, kind: input, shape index: {}]   ;;  %s371_s2 = inlined_call_operand.vmem [shape: f32[1,128], index: 2, kind: input, shape index: {}]   ;;  %s372_s3 = inlined_call_operand.vmem [shape: bf16[128,8], index: 3, kind: input, shape index: {}]   ;;  %s373_s4 = inlined_call_operand.vmem [shape: f32[1,8], index: 4, kind: input, shape index: {}]   ;;  %s374_s5 = inlined_call_operand.hbm [shape: f32[8,8], index: 5, kind: output, shape index: {}]  }
   0x1   :  { %v266_v0 = vld [vmem:[%s370_s1] sm:$0xff]   ;;  %237 = vmatprep.subr.bf16.mxu0 %v297_v1  ;;  %243 = vmatprep.subr.bf16.mxu1 %v297_v1  ;;  %v267_v3 = vld [vmem:[%s372_s3 + $0x38] sm:$0xff]   ;;  %v268_v5 = vld [vmem:[%s372_s3 + $0x30] sm:$0xff]  }
   0x2   :  { %v22_v2 = vld [vmem:[%s369_s0] sm:$0xff]  ;;  %238 = vmatpush3.bf16.msra.mxu0 %v266_v0  ;;  %239 = vmatprep.mubr.msk.bf16.mxu0 %vm298_vm1, %v297_v1  ;;  %v269_v6 = vld [vmem:[%s372_s3 + $0x28] sm:$0xff]  }
   0x3   :  { %v23_v4 = vpack.c.bf16 %v22_v2, %v22_v2  ;;  %244 = vmatpush3.bf16.msra.mxu1 %v267_v3  ;;  %259 = vmatprep.mubr.msk.bf16.mxu1 %vm298_vm1, %v297_v1 }
   0x4   :  { %245 = vmatprep.subr.bf16.mxu1 %v297_v1 }
   0x5   :  { %240 = vmatmul.mubr.msk.bf16.vlgmr.msra.gmra.mxu0 %vm39_vm0, %v23_v4 }
   0x7   :  { %246 = vmatpush3.bf16.msra.mxu1 %v268_v5 }
   0x8   :  { %247 = vmatprep.subr.bf16.mxu1 %v297_v1 }
   0x9   :  { %10 = vsyncpa [#allocation3], 0  ;;  %v270_v7 = vld [vmem:[%s372_s3 + $0x20] sm:$0xff]   ;;  %v271_v8 = vld [vmem:[%s372_s3 + $0x18] sm:$0xff]   ;;  %vm198_vm3 = vcmask 64512  }
   0xa   :  { %v272_v9 = vld [vmem:[%s372_s3 + $0x10] sm:$0xff]   ;;  %v273_v10 = vld [vmem:[%s372_s3 + $0x8] sm:$0xff]   ;;  %v274_v11 = vld [vmem:[%s372_s3] sm:$0xff]   ;;  %s299_s3 = smov [#allocation2]  }
   0xb   :  { %248 = vmatpush3.bf16.msra.mxu1 %v269_v6  ;;  %v214_v12 = vld [vmem:[%s371_s2] ss:$0 sm:$0xff]  ;;  %s206_s15 = sshll.u32 %s299_s3, 4  ;;  %s207_s15 = int_to_ptr.vmem [resolvable:$true] %s206_s15 }
   0xc   :  { %249 = vmatprep.subr.bf16.mxu1 %v297_v1  ;;  %v217_v21 = vld [vmem:[%s373_s4] ss:$0 sm:$0xff]  ;;  %s275_s2 = scalar_lea.vmem %s207_s15, 128  ;;  %p280_p1 = scmp.lt.s32.totalorder %s207_s15, %s207_s15 }
   0xd   :  { %p276_p0 = scmp.ne.s32.totalorder %s207_s15, %s275_s2  ;;  %p281_p2 = scmp.lt.s32.totalorder %s275_s2, %s275_s2 }
   0xf   :  { %250 = vmatpush3.bf16.msra.mxu1 %v270_v7  ;;  %p282_p3 = por %p281_p2, %p280_p1 }
  0x10   :  { %251 = vmatprep.subr.bf16.mxu1 %v297_v1 }
  0x11   :  { %p283_p4 = pnand %p282_p3, %p276_p0 }
  0x13   :  { %252 = vmatpush3.bf16.msra.mxu1 %v271_v8 }
  0x14   :  { %253 = vmatprep.subr.bf16.mxu1 %v297_v1 }
  0x17   :  { %254 = vmatpush3.bf16.msra.mxu1 %v272_v9 }
  0x18   :  { %255 = vmatprep.subr.bf16.mxu1 %v297_v1 }
  0x1b   :  { %256 = vmatpush3.bf16.msra.mxu1 %v273_v10 }
  0x1c   :  { %257 = vmatprep.subr.bf16.mxu1 %v297_v1 }
  0x1f   :  { %258 = vmatpush3.bf16.msra.mxu1 %v274_v11 }
  0xc5   :  { %v77_v13 = vpop.f32.mrf.mxu0 }
  0xc6   :  { %v78_v14 = vadd.f32 %v214_v12, %v77_v13 }
  0xc7   :  { %v241_v15 = vpop.f32.mrf.mxu0 }
  0xc8   :  { %vm83_vm2 = vcmp.ge.f32.partialorder %v78_v14, 0.0  ;;  %v84_v16 = vmul.f32 0.01, %v78_v14 }
  0xc9   :  { %v80_v17 = vpop.f32.mrf.mxu0 }
  0xca   :  { %v85_v18 = vsel %vm83_vm2, %v78_v14, %v84_v16 }
  0xcb   :  { %v242_v19 = vpop.f32.mrf.mxu0  ;;  %v86_v20 = vpack.c.bf16 %v85_v18, %v85_v18 }
  0xcd   :  { %260 = vmatmul.mubr.bf16.vlgmr.msra.gmra.mxu1 %v86_v20 }
 0x18d   :  { %v192_v22 = vpop.f32.mrf.mxu1 }
 0x18e   :  { %v193_v23 = vadd.f32 %v217_v21, %v192_v22 }
 0x18f   :  { %v261_v24 = vpop.f32.mrf.mxu1 }
 0x190   :  { %199 = vst.msk [vmem:[#allocation2] sm:$0xff] %vm198_vm3, %v193_v23 }
 0x191   :  { %v195_v25 = vpop.f32.mrf.mxu1 }
 0x192   :  { %286 = shalt.err (!%p283_p4)
}
 0x193   :  { %209 = dma.vmem_to_hbm [thread:$0]  %s207_s15, 128, %s374_s5, [#allocation3]   ;;  %v262_v26 = vpop.f32.mrf.mxu1 }
 0x194   :  { %295 = dma.done.wait [#allocation3], 128  }
 0x195   :  { %296 = vsyncadd [#allocation3], 4294967168 }
 0x196   :  { %213 = vsyncpa [#allocation3], 1 }

</bundles_post_ra>
